<compile_context>
chip_gen: v7x
topology: tpu7x:2x2x1
jax: 0.10.0
libtpu: 0.0.40
codegen_flags: <defaults>
</compile_context>

<pallas_src>
import functools

import jax
import jax.numpy as jnp
from jax import lax
from jax.experimental import pallas as pl
from jax.experimental.pallas import tpu as pltpu

HIDDEN = 500          # fixed by the module definition
BN_EPS = 1e-5
ALPHA_FLOOR = 1e-5
SOFTPLUS_THRESHOLD = 20.0


def _round_up(x, m):
    return (x + m - 1) // m * m


# --------------------------------------------------------------------------
# Stage 1 kernel: z = ReLU(x @ W1 + b1) @ W2 + b2, tiled over (batch, vocab)
# --------------------------------------------------------------------------
def encoder_mm_kernel(x_ref, w1_ref, b1_ref, w2_ref, b2_ref, z_ref, acc_ref):
    """
    x_ref : [TM, TK]      bf16   (x tile)
    w1_ref: [TK, HP]      bf16   (W1 panel, HP = 512)
    b1_ref: [1, HP]       f32    (VMEM resident)
    w2_ref: [HP, KP]      f32    (VMEM resident, KP = round_up(K, 128))
    b2_ref: [1, KP]       f32    (VMEM resident)
    z_ref : [TM, KP]      f32    (output tile, resident across the vocab axis)
    acc_ref:[TM, HP]      f32    (scratch accumulator)
    """
    k = pl.program_id(1)

    @pl.when(k == 0)
    def _():
        acc_ref[...] = jnp.zeros_like(acc_ref)

    # MXU matmul, bf16 inputs, f32 accumulation.
    acc_ref[...] += jnp.dot(x_ref[...], w1_ref[...],
                            preferred_element_type=jnp.float32)

    @pl.when(k == pl.num_programs(1) - 1)
    def _():
        h = jnp.maximum(acc_ref[...] + b1_ref[...], 0.0)
        # TODO(synk): Dropout(p=0.25) is identity (eval-mode); training RNG not reproduced.
        z = jnp.dot(h, w2_ref[...], preferred_element_type=jnp.float32) + b2_ref[...]
        z_ref[...] = z


# --------------------------------------------------------------------------
# Stage 2 kernel: BatchNorm1d(affine=False, batch stats) -> Softplus -> clamp
# Tiled over 128-wide column panels; full (real) batch resident per panel.
# --------------------------------------------------------------------------
def bn_softplus_kernel(z_ref, o_ref):
    z = z_ref[...]
    mean = jnp.mean(z, axis=0, keepdims=True)
    centered = z - mean
    var = jnp.mean(centered * centered, axis=0, keepdims=True)   # biased variance
    z_hat = centered * lax.rsqrt(var + BN_EPS)
    sp = jnp.where(
        z_hat > SOFTPLUS_THRESHOLD,
        z_hat,
        jnp.log1p(jnp.exp(jnp.minimum(z_hat, SOFTPLUS_THRESHOLD))),
    )
    o_ref[...] = jnp.maximum(sp, ALPHA_FLOOR)


# --------------------------------------------------------------------------
# Wrapper
# --------------------------------------------------------------------------
@functools.partial(jax.jit, static_argnames=("tm", "tk"))
def encoder_forward(x, w1, b1, w2, b2, *, tm=None, tk=None):
    """x: [B, V] f32, w1: [V, H] f32, b1: [1, H], w2: [H, K], b2: [1, K]
    -> alpha: [B, K] f32."""
    B, V = x.shape
    H = w1.shape[1]
    K = w2.shape[1]

    HP = _round_up(H, 128)      # 500 -> 512
    KP = _round_up(K, 128)      # lane-dense output tile

    # Tile sizes: multiples of (16, 128) so bf16 tiles are layout-clean.
    # Defaults keep 2-deep double buffering comfortably under the scoped VMEM
    # default on every generation (v5e 16 MiB, v6e 32 MiB, v7x 32/64 MiB):
    # x (TM,TK) bf16 + W1 (TK,512) bf16 ~ 1.5 MiB per buffer at TM=256,TK=1024.
    if tm is None:
        tm = min(256, _round_up(B, 16))
    if tk is None:
        tk = min(1024, _round_up(V, 128))

    B_pad = _round_up(B, tm)
    V_pad = _round_up(V, tk)

    # Zero-pad + cast.  bf16 for the streamed operands (x, W1); padded W1
    # columns / W2 rows / b2 columns are zero so the math is unchanged.
    x_p = jnp.pad(x.astype(jnp.bfloat16), ((0, B_pad - B), (0, V_pad - V)))
    w1_p = jnp.pad(w1.astype(jnp.bfloat16), ((0, V_pad - V), (0, HP - H)))
    b1_p = jnp.pad(b1.astype(jnp.float32), ((0, 0), (0, HP - H)))
    w2_p = jnp.pad(w2.astype(jnp.float32), ((0, HP - H), (0, KP - K)))
    b2_p = jnp.pad(b2.astype(jnp.float32), ((0, 0), (0, KP - K)))

    grid = (B_pad // tm, V_pad // tk)

    flops = 2 * B_pad * V_pad * HP + 2 * B_pad * HP * KP
    bytes_accessed = (
        x_p.size * 2                      # x, bf16, streamed once
        + w1_p.size * 2 * grid[0]         # W1, bf16, re-streamed per batch tile
        + (b1_p.size + w2_p.size + b2_p.size) * 4
        + B_pad * KP * 4                  # z writeback
    )

    z_pad = pl.pallas_call(
        encoder_mm_kernel,
        out_shape=jax.ShapeDtypeStruct((B_pad, KP), jnp.float32),
        grid_spec=pltpu.PrefetchScalarGridSpec(
            num_scalar_prefetch=0,
            grid=grid,
            in_specs=[
                pl.BlockSpec((tm, tk), lambda i, k: (i, k)),     # x tile
                pl.BlockSpec((tk, HP), lambda i, k: (k, 0)),     # W1 panel
                pl.BlockSpec((1, HP), lambda i, k: (0, 0)),      # b1 (resident)
                pl.BlockSpec((HP, KP), lambda i, k: (0, 0)),     # W2 (resident, tiny)
                pl.BlockSpec((1, KP), lambda i, k: (0, 0)),      # b2 (resident)
            ],
            out_specs=pl.BlockSpec((tm, KP), lambda i, k: (i, 0)),
            scratch_shapes=[pltpu.VMEM((tm, HP), jnp.float32)],
        ),
        compiler_params=pltpu.CompilerParams(
            dimension_semantics=("parallel", "arbitrary")),
        cost_estimate=pl.CostEstimate(
            flops=flops, transcendentals=0, bytes_accessed=bytes_accessed),
    )(x_p, w1_p, b1_p, w2_p, b2_p)

    # Strip the padded batch rows BEFORE BatchNorm: batch statistics must be
    # computed over exactly the real batch rows.  Padded columns are kept
    # (per-column stats are independent) so stage-2 stores stay lane-dense.
    z_real = z_pad[:B, :]

    alpha_pad = pl.pallas_call(
        bn_softplus_kernel,
        out_shape=jax.ShapeDtypeStruct((B, KP), jnp.float32),
        grid_spec=pltpu.PrefetchScalarGridSpec(
            num_scalar_prefetch=0,
            grid=(KP // 128,),
            in_specs=[pl.BlockSpec((B, 128), lambda j: (0, j))],
            out_specs=pl.BlockSpec((B, 128), lambda j: (0, j)),
        ),
        compiler_params=pltpu.CompilerParams(
            dimension_semantics=("parallel",)),
    )(z_real)

    return alpha_pad[:, :K]


# --------------------------------------------------------------------------
# Params / reference
# --------------------------------------------------------------------------
def init_params(key, vocab_size, num_topics):
    """Deterministic init mirroring nn.Linear's default U(-1/sqrt(fan_in), +)."""
    k1, k2, k3, k4 = jax.random.split(key, 4)
    bound1 = 1.0 / jnp.sqrt(vocab_size)
    bound2 = 1.0 / jnp.sqrt(HIDDEN)
    w1 = jax.random.uniform(k1, (vocab_size, HIDDEN), jnp.float32, -bound1, bound1)
    b1 = jax.random.uniform(k2, (1, HIDDEN), jnp.float32, -bound1, bound1)
    w2 = jax.random.uniform(k3, (HIDDEN, num_topics), jnp.float32, -bound2, bound2)
    b2 = jax.random.uniform(k4, (1, num_topics), jnp.float32, -bound2, bound2)
    return w1, b1, w2, b2


def reference_forward(x, w1, b1, w2, b2):
    """Pure-JAX reference with matching precision (bf16 first matmul, f32 acc)."""
    h = jnp.dot(x.astype(jnp.bfloat16), w1.astype(jnp.bfloat16),
                preferred_element_type=jnp.float32) + b1
    h = jnp.maximum(h, 0.0)
    z = jnp.dot(h, w2, preferred_element_type=jnp.float32) + b2
    mean = jnp.mean(z, axis=0, keepdims=True)
    var = jnp.mean((z - mean) ** 2, axis=0, keepdims=True)
    z_hat = (z - mean) / jnp.sqrt(var + BN_EPS)
    sp = jnp.where(
        z_hat > SOFTPLUS_THRESHOLD,
        z_hat,
        jnp.log1p(jnp.exp(jnp.minimum(z_hat, SOFTPLUS_THRESHOLD))),
    )
    return jnp.maximum(sp, ALPHA_FLOOR)


if __name__ == "__main__":
    batch = 24
    vocab_size = 256
    num_topics = 16

    key = jax.random.PRNGKey(0)
    kx, kp = jax.random.split(key)

    # Bag-of-words style non-negative input, like a document-term count vector.
    x = jax.random.uniform(kx, (batch, vocab_size), jnp.float32, 0.0, 5.0)
    w1, b1, w2, b2 = init_params(kp, vocab_size, num_topics)

    # Small tiles here so the demo exercises both grid axes
    # (2 batch tiles x 2 vocab-reduction steps); production uses the defaults.
    alpha = encoder_forward(x, w1, b1, w2, b2, tm=16, tk=128)
    alpha = jax.block_until_ready(alpha)

    ref = reference_forward(x, w1, b1, w2, b2)
    assert alpha.shape == (batch, num_topics)
    assert bool(jnp.all(alpha >= ALPHA_FLOOR))
    assert bool(jnp.allclose(alpha, ref, rtol=5e-3, atol=5e-3))

    print("KERNEL_OK")
</pallas_src>

<mosaic_0001>
module attributes {stable_mosaic.version = 11 : i64} {
  func.func @encoder_mm_kernel(%arg0: i32, %arg1: i32, %arg2: memref<16x128xbf16, #tpu.memory_space<vmem>>, %arg3: memref<128x512xbf16, #tpu.memory_space<vmem>>, %arg4: memref<1x512xf32, #tpu.memory_space<vmem>>, %arg5: memref<512x128xf32, #tpu.memory_space<vmem>>, %arg6: memref<1x128xf32, #tpu.memory_space<vmem>>, %arg7: memref<16x128xf32, #tpu.memory_space<vmem>>, %arg8: memref<16x512xf32, #tpu.memory_space<vmem>>) attributes {dimension_semantics = [#tpu.dimension_semantics<parallel>, #tpu.dimension_semantics<arbitrary>], iteration_bounds = array<i64: 2, 2>, scalar_prefetch = 0 : i64, scratch_operands = 1 : i64, tpu.core_type = #tpu.core_type<tc>, window_params = [{transform_indices = @transform_0, window_bounds = array<i64: 16, 128>}, {transform_indices = @transform_1, window_bounds = array<i64: 128, 512>}, {pipeline_mode = #tpu.pipeline_mode<synchronous>, transform_indices = @transform_2, window_bounds = array<i64: 1, 512>}, {pipeline_mode = #tpu.pipeline_mode<synchronous>, transform_indices = @transform_3, window_bounds = array<i64: 512, 128>}, {pipeline_mode = #tpu.pipeline_mode<synchronous>, transform_indices = @transform_4, window_bounds = array<i64: 1, 128>}, {transform_indices = @transform_5, window_bounds = array<i64: 16, 128>}]} {
    %c0_i32 = arith.constant 0 : i32
    %0 = arith.cmpi eq, %arg1, %c0_i32 : i32
    %1 = arith.extui %0 : i1 to i32
    %c0_i32_0 = arith.constant 0 : i32
    %2 = arith.cmpi ne, %1, %c0_i32_0 : i32
    scf.if %2 {
      %cst_9 = arith.constant 0.000000e+00 : f32
      %12 = vector.broadcast %cst_9 : f32 to vector<16x512xf32>
      %c0_10 = arith.constant 0 : index
      %c0_11 = arith.constant 0 : index
      %13 = vector.load %arg8[%c0_10, %c0_11] : memref<16x512xf32, #tpu.memory_space<vmem>>, vector<16x512xf32>
      tpu.vector_store %arg8[%c0_10, %c0_11], %12 {strides = array<i32>} : memref<16x512xf32, #tpu.memory_space<vmem>>, vector<16x512xf32>,
    } else {
    }
    %c0 = arith.constant 0 : index
    %c0_1 = arith.constant 0 : index
    %3 = vector.load %arg8[%c0, %c0_1] : memref<16x512xf32, #tpu.memory_space<vmem>>, vector<16x512xf32>
    %c0_2 = arith.constant 0 : index
    %c0_3 = arith.constant 0 : index
    %4 = vector.load %arg2[%c0_2, %c0_3] : memref<16x128xbf16, #tpu.memory_space<vmem>>, vector<16x128xbf16>
    %c0_4 = arith.constant 0 : index
    %c0_5 = arith.constant 0 : index
    %5 = vector.load %arg3[%c0_4, %c0_5] : memref<128x512xbf16, #tpu.memory_space<vmem>>, vector<128x512xbf16>
    %cst = arith.constant dense<0.000000e+00> : vector<16x512xf32>
    %6 = tpu.matmul %4, %5, %cst {dimension_numbers = #tpu.dot_dimension_numbers<[1], [0], [0], [1], [0, 0, 1, 1], [], []>} : vector<16x128xbf16>, vector<128x512xbf16>, vector<16x512xf32> -> vector<16x512xf32>
    %7 = arith.addf %3, %6 : vector<16x512xf32>
    %c0_6 = arith.constant 0 : index
    %c0_7 = arith.constant 0 : index
    %8 = vector.load %arg8[%c0_6, %c0_7] : memref<16x512xf32, #tpu.memory_space<vmem>>, vector<16x512xf32>
    tpu.vector_store %arg8[%c0_6, %c0_7], %7 {strides = array<i32>} : memref<16x512xf32, #tpu.memory_space<vmem>>, vector<16x512xf32>,
    %c1_i32 = arith.constant 1 : i32
    %9 = arith.cmpi eq, %arg1, %c1_i32 : i32
    %10 = arith.extui %9 : i1 to i32
    %c0_i32_8 = arith.constant 0 : i32
    %11 = arith.cmpi ne, %10, %c0_i32_8 : i32
    scf.if %11 {
      %c0_9 = arith.constant 0 : index
      %c0_10 = arith.constant 0 : index
      %12 = vector.load %arg8[%c0_9, %c0_10] : memref<16x512xf32, #tpu.memory_space<vmem>>, vector<16x512xf32>
      %c0_11 = arith.constant 0 : index
      %c0_12 = arith.constant 0 : index
      %13 = vector.load %arg4[%c0_11, %c0_12] : memref<1x512xf32, #tpu.memory_space<vmem>>, vector<1x512xf32>
      %14 = vector.broadcast %13 : vector<1x512xf32> to vector<16x512xf32>
      %15 = arith.addf %12, %14 : vector<16x512xf32>
      %cst_13 = arith.constant 0.000000e+00 : f32
      %16 = vector.broadcast %cst_13 : f32 to vector<16x512xf32>
      %17 = arith.maximumf %15, %16 : vector<16x512xf32>
      %c0_14 = arith.constant 0 : index
      %c0_15 = arith.constant 0 : index
      %18 = vector.load %arg5[%c0_14, %c0_15] : memref<512x128xf32, #tpu.memory_space<vmem>>, vector<512x128xf32>
      %cst_16 = arith.constant dense<0.000000e+00> : vector<16x128xf32>
      %19 = tpu.matmul %17, %18, %cst_16 {dimension_numbers = #tpu.dot_dimension_numbers<[1], [0], [0], [1], [0, 0, 1, 1], [], []>} : vector<16x512xf32>, vector<512x128xf32>, vector<16x128xf32> -> vector<16x128xf32>
      %c0_17 = arith.constant 0 : index
      %c0_18 = arith.constant 0 : index
      %20 = vector.load %arg6[%c0_17, %c0_18] : memref<1x128xf32, #tpu.memory_space<vmem>>, vector<1x128xf32>
      %21 = vector.broadcast %20 : vector<1x128xf32> to vector<16x128xf32>
      %22 = arith.addf %19, %21 : vector<16x128xf32>
      %c0_19 = arith.constant 0 : index
      %c0_20 = arith.constant 0 : index
      %23 = vector.load %arg7[%c0_19, %c0_20] : memref<16x128xf32, #tpu.memory_space<vmem>>, vector<16x128xf32>
      tpu.vector_store %arg7[%c0_19, %c0_20], %22 {strides = array<i32>} : memref<16x128xf32, #tpu.memory_space<vmem>>, vector<16x128xf32>,
    } else {
    }
    return
  }
  func.func @transform_0(%arg0: i32, %arg1: i32) -> (i32, i32) {
    %c0_i32 = arith.constant 0 : i32
    return %arg0, %arg1 : i32, i32
  }
  func.func @transform_1(%arg0: i32, %arg1: i32) -> (i32, i32) {
    %c0_i32 = arith.constant 0 : i32
    %c0_i32_0 = arith.constant 0 : i32
    return %arg1, %c0_i32 : i32, i32
  }
  func.func @transform_2(%arg0: i32, %arg1: i32) -> (i32, i32) {
    %c0_i32 = arith.constant 0 : i32
    %c0_i32_0 = arith.constant 0 : i32
    %c0_i32_1 = arith.constant 0 : i32
    return %c0_i32, %c0_i32_0 : i32, i32
  }
  func.func @transform_3(%arg0: i32, %arg1: i32) -> (i32, i32) {
    %c0_i32 = arith.constant 0 : i32
    %c0_i32_0 = arith.constant 0 : i32
    %c0_i32_1 = arith.constant 0 : i32
    return %c0_i32, %c0_i32_0 : i32, i32
  }
  func.func @transform_4(%arg0: i32, %arg1: i32) -> (i32, i32) {
    %c0_i32 = arith.constant 0 : i32
    %c0_i32_0 = arith.constant 0 : i32
    %c0_i32_1 = arith.constant 0 : i32
    return %c0_i32, %c0_i32_0 : i32, i32
  }
  func.func @transform_5(%arg0: i32, %arg1: i32) -> (i32, i32) {
    %c0_i32 = arith.constant 0 : i32
    %c0_i32_0 = arith.constant 0 : i32
    return %arg0, %c0_i32 : i32, i32
  }
}

module attributes {stable_mosaic.version = 11 : i64} {
  func.func @bn_softplus_kernel(%arg0: i32, %arg1: memref<24x128xf32, #tpu.memory_space<vmem>>, %arg2: memref<24x128xf32, #tpu.memory_space<vmem>>) attributes {dimension_semantics = [#tpu.dimension_semantics<parallel>], iteration_bounds = array<i64: 1>, scalar_prefetch = 0 : i64, scratch_operands = 0 : i64, tpu.core_type = #tpu.core_type<tc>, window_params = [{transform_indices = @transform_0, window_bounds = array<i64: 24, 128>}, {transform_indices = @transform_1, window_bounds = array<i64: 24, 128>}]} {
    %c0 = arith.constant 0 : index
    %c0_0 = arith.constant 0 : index
    %0 = vector.load %arg1[%c0, %c0_0] : memref<24x128xf32, #tpu.memory_space<vmem>>, vector<24x128xf32>
    %cst = arith.constant dense<0.000000e+00> : vector<128xf32>
    %1 = vector.multi_reduction <add>, %0, %cst [0] : vector<24x128xf32> to vector<128xf32>
    %2 = vector.shape_cast %1 : vector<128xf32> to vector<1x128xf32>
    %cst_1 = arith.constant 2.400000e+01 : f32
    %3 = vector.broadcast %cst_1 : f32 to vector<1x128xf32>
    %4 = arith.divf %2, %3 : vector<1x128xf32>
    %5 = vector.broadcast %4 : vector<1x128xf32> to vector<24x128xf32>
    %6 = arith.subf %0, %5 : vector<24x128xf32>
    %7 = arith.mulf %6, %6 : vector<24x128xf32>
    %cst_2 = arith.constant dense<0.000000e+00> : vector<128xf32>
    %8 = vector.multi_reduction <add>, %7, %cst_2 [0] : vector<24x128xf32> to vector<128xf32>
    %9 = vector.shape_cast %8 : vector<128xf32> to vector<1x128xf32>
    %cst_3 = arith.constant 2.400000e+01 : f32
    %10 = vector.broadcast %cst_3 : f32 to vector<1x128xf32>
    %11 = arith.divf %9, %10 : vector<1x128xf32>
    %cst_4 = arith.constant 9.99999974E-6 : f32
    %12 = vector.broadcast %cst_4 : f32 to vector<1x128xf32>
    %13 = arith.addf %11, %12 : vector<1x128xf32>
    %14 = math.rsqrt %13 : vector<1x128xf32>
    %15 = vector.broadcast %14 : vector<1x128xf32> to vector<24x128xf32>
    %16 = arith.mulf %6, %15 : vector<24x128xf32>
    %cst_5 = arith.constant 2.000000e+01 : f32
    %17 = vector.broadcast %cst_5 : f32 to vector<24x128xf32>
    %18 = arith.cmpf ogt, %16, %17 : vector<24x128xf32>
    %cst_6 = arith.constant 2.000000e+01 : f32
    %19 = vector.broadcast %cst_6 : f32 to vector<24x128xf32>
    %20 = arith.minimumf %16, %19 : vector<24x128xf32>
    %21 = math.exp %20 : vector<24x128xf32>
    %22 = math.log1p %21 : vector<24x128xf32>
    %23 = arith.select %18, %16, %22 : vector<24x128xi1>, vector<24x128xf32>
    %cst_7 = arith.constant 9.99999974E-6 : f32
    %24 = vector.broadcast %cst_7 : f32 to vector<24x128xf32>
    %25 = arith.maximumf %23, %24 : vector<24x128xf32>
    %c0_8 = arith.constant 0 : index
    %c0_9 = arith.constant 0 : index
    %26 = vector.load %arg2[%c0_8, %c0_9] : memref<24x128xf32, #tpu.memory_space<vmem>>, vector<24x128xf32>
    tpu.vector_store %arg2[%c0_8, %c0_9], %25 {strides = array<i32>} : memref<24x128xf32, #tpu.memory_space<vmem>>, vector<24x128xf32>,
    return
  }
  func.func @transform_0(%arg0: i32) -> (i32, i32) {
    %c0_i32 = arith.constant 0 : i32
    %c0_i32_0 = arith.constant 0 : i32
    return %c0_i32, %arg0 : i32, i32
  }
  func.func @transform_1(%arg0: i32) -> (i32, i32) {
    %c0_i32 = arith.constant 0 : i32
    %c0_i32_0 = arith.constant 0 : i32
    return %c0_i32, %arg0 : i32, i32
  }
}

</mosaic_0001>

<bundles_post_ra>
// kernel: encoder_forward.3
= control target key start
LH: loop header
LB: loop body
LE: loop exit
PB: predicated region body
PF: predicated region fallthrough
CT: control target
= control target key end

     0   :  { %s141_s0 = inlined_call_operand.vmem [shape: f32[24,128], index: 0, kind: input, shape index: {}]   ;;  %s142_s1 = inlined_call_operand.vmem [shape: f32[24,128], index: 1, kind: output, shape index: {}]  }
   0x1   :  { %v8_v0 = vld [vmem:[%s141_s0] sm:$0xff]  ;;  %v9_v1 = vld [vmem:[%s141_s0 + $0x8] sm:$0xff]  ;;  %v10_v2 = vld [vmem:[%s141_s0 + $0x10] sm:$0xff] }
   0x2   :  { %v11_v3 = vadd.f32 %v9_v1, %v8_v0 }
   0x4   :  { %v12_v4 = vadd.f32 %v11_v3, %v10_v2 }
   0x6   :  { %v13_v5 = vrot.slane %v12_v4, 4 }
   0x8   :  { %v14_v6 = vadd.f32 %v13_v5, %v12_v4 }
   0xa   :  { %v15_v7 = vrot.slane %v14_v6, 2 }
   0xc   :  { %v16_v8 = vadd.f32 %v15_v7, %v14_v6 }
   0xe   :  { %v17_v9 = vrot.slane %v16_v8, 1 }
  0x10   :  { %v18_v10 = vadd.f32 %v17_v9, %v16_v8 }
  0x12   :  { %v20_v11 = vmul.f32 0.041666668, %v18_v10 }
  0x14   :  { %v21_v12 = vsub.f32 %v8_v0, %v20_v11  ;;  %v22_v13 = vsub.f32 %v9_v1, %v20_v11  ;;  %v23_v14 = vsub.f32 %v10_v2, %v20_v11 }
  0x16   :  { %v24_v15 = vmul.f32 %v21_v12, %v21_v12  ;;  %v25_v16 = vmul.f32 %v22_v13, %v22_v13  ;;  %v26_v17 = vmul.f32 %v23_v14, %v23_v14 }
  0x18   :  { %v27_v18 = vadd.f32 %v25_v16, %v24_v15 }
  0x1a   :  { %v28_v19 = vadd.f32 %v27_v18, %v26_v17 }
  0x1c   :  { %v29_v20 = vrot.slane %v28_v19, 4 }
  0x1e   :  { %v30_v21 = vadd.f32 %v29_v20, %v28_v19 }
  0x20   :  { %v31_v22 = vrot.slane %v30_v21, 2 }
  0x22   :  { %v32_v23 = vadd.f32 %v31_v22, %v30_v21 }
  0x24   :  { %v33_v24 = vrot.slane %v32_v23, 1 }
  0x26   :  { %v34_v25 = vadd.f32 %v33_v24, %v32_v23 }
  0x28   :  { %v35_v26 = vmul.f32 0.041666668, %v34_v25 }
  0x2a   :  { %v36_v27 = vadd.f32 1e-05, %v35_v26 }
  0x2c   :  { %93 = vrsqrt.f32 %v36_v27 }
  0x36   :  { %v94_v28 = vpop.eup %93 }
  0x37   :  { %v38_v29 = vmul.f32 %v94_v28, %v21_v12  ;;  %v39_v30 = vmul.f32 %v94_v28, %v22_v13  ;;  %v40_v31 = vmul.f32 %v94_v28, %v23_v14 }
  0x39   :  { %v44_v32 = vmin.f32 %v38_v29, 20.0  ;;  %v45_v33 = vmin.f32 %v39_v30, 20.0  ;;  %v46_v34 = vmin.f32 %v40_v31, 20.0  ;;  %vm41_vm1 = vcmp.gt.f32.partialorder %v38_v29, 20.0 }
  0x3a   :  { %vm42_vm3 = vcmp.gt.f32.partialorder %v39_v30, 20.0  ;;  %vm43_vm5 = vcmp.gt.f32.partialorder %v40_v31, 20.0 }
  0x3b   :  { %v47_v35 = vmul.f32 1.442695, %v44_v32  ;;  %v49_v36 = vmul.f32 1.442695, %v45_v33  ;;  %v51_v37 = vmul.f32 1.442695, %v46_v34 }
  0x3d   :  { %95 = vpow2.f32 %v47_v35 }
  0x3e   :  { %97 = vpow2.f32 %v49_v36 }
  0x3f   :  { %99 = vpow2.f32 %v51_v37 }
  0x47   :  { %v96_v38 = vpop.eup %95 }
  0x48   :  { %v98_v39 = vpop.eup %97  ;;  %v53_v40 = vadd.f32 1.0, %v96_v38  ;;  %v56_v44 = vmul.f32 -0.5, %v96_v38  ;;  %v59_v48 = vand.u32 2147483647, %v96_v38 }
  0x49   :  { %v100_v41 = vpop.eup %99  ;;  %v62_v42 = vadd.f32 1.0, %v98_v39  ;;  %v65_v45 = vmul.f32 -0.5, %v98_v39  ;;  %v68_v50 = vand.u32 2147483647, %v98_v39 }
  0x4a   :  { %101 = vlog2.f32 %v53_v40  ;;  %v71_v43 = vadd.f32 1.0, %v100_v41  ;;  %v74_v46 = vmul.f32 -0.5, %v100_v41  ;;  %v57_v47 = vadd.f32 1.0, %v56_v44 }
  0x4b   :  { %103 = vlog2.f32 %v62_v42  ;;  %v66_v49 = vadd.f32 1.0, %v65_v45  ;;  %v77_v52 = vand.u32 2147483647, %v100_v41  ;;  %vm126_vm0 = vcmp.lt.f32.partialorder %v59_v48, 0.0004427343 }
  0x4c   :  { %105 = vlog2.f32 %v71_v43  ;;  %v75_v51 = vadd.f32 1.0, %v74_v46  ;;  %v58_v53 = vmul.f32 %v96_v38, %v57_v47  ;;  %vm69_vm2 = vcmp.lt.f32.partialorder %v68_v50, 0.0004427343 }
  0x4d   :  { %v67_v56 = vmul.f32 %v98_v39, %v66_v49  ;;  %vm78_vm4 = vcmp.lt.f32.partialorder %v77_v52, 0.0004427343 }
  0x4e   :  { %v76_v59 = vmul.f32 %v100_v41, %v75_v51 }
  0x54   :  { %v102_v54 = vpop.eup %101 }
  0x55   :  { %v104_v57 = vpop.eup %103  ;;  %v55_v58 = vmul.f32 0.6931472, %v102_v54 }
  0x56   :  { %v106_v60 = vpop.eup %105  ;;  %v64_v61 = vmul.f32 0.6931472, %v104_v57 }
  0x57   :  { %v61_v62 = vsel %vm126_vm0, %v58_v53, %v55_v58  ;;  %v73_v63 = vmul.f32 0.6931472, %v106_v60 }
  0x58   :  { %v80_v0 = vsel %vm41_vm1, %v38_v29, %v61_v62  ;;  %v70_v1 = vsel %vm69_vm2, %v67_v56, %v64_v61 }
  0x59   :  { %v83_v2 = vmax.f32 %v80_v0, 1e-05  ;;  %v81_v3 = vsel %vm42_vm3, %v39_v30, %v70_v1  ;;  %v79_v4 = vsel %vm78_vm4, %v76_v59, %v73_v63 }
  0x5a   :  { %v84_v5 = vmax.f32 %v81_v3, 1e-05  ;;  %v82_v6 = vsel %vm43_vm5, %v40_v31, %v79_v4 }
  0x5b   :  { %86 = vst [vmem:[%s142_s1] sm:$0xff] %v83_v2  ;;  %v85_v7 = vmax.f32 %v82_v6, 1e-05 }
  0x5c   :  { %87 = vst [vmem:[%s142_s1 + $0x8] sm:$0xff] %v84_v5 }
  0x5d   :  { %88 = vst [vmem:[%s142_s1 + $0x10] sm:$0xff] %v85_v7 }

// kernel: encoder_forward.2
= control target key start
LH: loop header
LB: loop body
LE: loop exit
PB: predicated region body
PF: predicated region fallthrough
CT: control target
= control target key end

     0   :  { %s1388_s18 = smov 0   ;;  %s1390_s19 = smov 0   ;;  %s1723_s0 = inlined_call_operand.vmem [shape: bf16[32,256], index: 0, kind: input, shape index: {}]   ;;  %s1724_s1 = inlined_call_operand.vmem [shape: bf16[256,512], index: 1, kind: input, shape index: {}]   ;;  %s1725_s2 = inlined_call_operand.vmem [shape: f32[1,512], index: 2, kind: input, shape index: {}]   ;;  %s1726_s3 = inlined_call_operand.vmem [shape: f32[512,128], index: 3, kind: input, shape index: {}]   ;;  %s1727_s4 = inlined_call_operand.vmem [shape: f32[1,128], index: 4, kind: input, shape index: {}]   ;;  %s1728_s5 = inlined_call_operand.vmem [shape: f32[32,128], index: 5, kind: output, shape index: {}]  }
   0x1   :  { %s1392_s20 = smov 0   ;;  %s1394_s21 = smov 0  }
   0x2   :  { %s1396_s22 = smov 0   ;;  %s1398_s23 = smov 0  }
   0x3   :  { %s1400_s24 = smov 0  }
   0x4 LB: > { %s24_s25 = sadd.s32 1, %s1346_s22  ;;  %s27_s26 = sadd.s32 1, %s1350_s23  ;;  %s1354_s24 = sphi %s1400_s24, %s15_s24   ;;  %s1350_s23 = sphi %s1398_s23, %s1734_s23   ;;  %s1346_s22 = sphi %s1396_s22, %s1733_s22   ;;  %s1342_s21 = sphi %s1394_s21, %s1732_s21   ;;  %s1338_s20 = sphi %s1392_s20, %s1731_s20   ;;  %s1334_s19 = sphi %s1390_s19, %s1730_s19   ;;  %s1330_s18 = sphi %s1388_s18, %s1729_s18  }
   0x5   : > { %p25_p0 = scmp.ge.s32.totalorder %s24_s25, 2  ;;  %p43_p1 = scmp.ne.s32.totalorder %s1334_s19, %s1330_s18 }
   0x6   : > { %p44_p2 = scmp.eq.s32.totalorder %s1354_s24, 0  ;;  %s36_s30 = sadd.s32 1, %s1334_s19 }
   0x7   : > { %s1736_s25 = smov (%p25_p0, %s24_s25), 0  ;;  %s1738_s26 = smov (!%p25_p0, %s27_s26), %s1350_s23 }
   0x8   : > { %p45_p3 = por %p44_p2, %p43_p1  ;;  %p29_p4 = scmp.ge.s32.totalorder %s1738_s26, 2 }
   0x9   : > { %s32_s27 = ssub.s32 %s1346_s22, %s1736_s25  ;;  %p1001_p6 = scmp.ge.s32.totalorder %s1354_s24, 4 }
   0xa   : > { %s1740_s26 = smov (%p29_p4, %s1738_s26), 0 }
   0xb   : > { %s31_s28 = ssub.s32 %s1350_s23, %s1740_s26  ;;  %193 = sbr.rel (%p1001_p6) target bundleno = 25 (0x19), region = 28 }
   0xc   : > { %s33_s29 = sor.u32 %s32_s27, %s31_s28 }
   0xd   : > { %p34_p5 = scmp.eq.s32.totalorder %s33_s29, 0 }
   0xf   : > { %s1439_s6 = scalar_select %p34_p5, %s1334_s19, %s36_s30  }
  0x12   : > { %196 = sbr.rel (!%p45_p3) target bundleno = 25 (0x19), region = 32  ;;  %s198_s7 = sand.u32 (%p45_p3), 1, %s1334_s19  }
  0x13   : > { %s1051_s8 = sshll.u32 (%p45_p3), %s1350_s23, 2  ;;  %s1002_s9 = sshll.u32 (%p45_p3), %s198_s7, 3 }
  0x14   : > { %s203_s10 = sadd.s32 (%p45_p3), %s1346_s22, %s1051_s8  ;;  %s200_s15 = scalar_lea.vmem (%p45_p3), [#allocation3], %s1002_s9 }
  0x15   : > { %s1005_s11 = sshll.u32 (%p45_p3), %s203_s10, 2 }
  0x16   : > { %s205_s14 = scalar_lea.vmem (%p45_p3), %s1723_s0, %s1005_s11 }
  0x17   : > { %v221_v0 = vld [vmem:[%s205_s14] sm:$0xf] (%p45_p3)  ;;  %v223_v1 = vld [vmem:[%s205_s14 + $0x8] sm:$0xf] (%p45_p3) }
  0x18   : > { %222 = vst [vmem:[%s200_s15] sm:$0xf] (%p45_p3), %v221_v0  ;;  %224 = vst [vmem:[%s200_s15 + $0x4] sm:$0xf] (%p45_p3), %v223_v1 }
  0x19 PF: > { %p1006_p7 = scmp.ge.s32.totalorder %s1354_s24, 1  ;;  %p260_p8 = scmp.lt.s32.totalorder %s1354_s24, 5 }
  0x1b   : > { %p261_p9 = pnand %p1006_p7, %p260_p8 }
  0x1c   : > { %s267_s16 = sand.u32 (!%p261_p9), 1, %s1330_s18   ;;  %s1008_s17 = sshll.u32 (!%p261_p9), %s1338_s20, 4 }
  0x1d   : > { %264 = sbr.rel (%p261_p9) target bundleno = 540 (0x21c), region = 77  ;;  %s1452_s27 = sshll.u32 (!%p261_p9), %s267_s16, 3 }
  0x1e   : > { %p302_p10 = scmp.lt.s32.totalorder (!%p261_p9), %s1008_s17, 31  ;;  %s1011_s28 = sshll.u32 (!%p261_p9), %s1342_s21, 1 }
  0x1f   : > { %p309_p11 = scmp.lt.s32.totalorder (!%p261_p9), %s1011_s28, 3  ;;  %s269_s12 = scalar_lea.vmem (!%p261_p9), [#allocation3], %s1452_s27 }
  0x20   : > { %p1013_p12 = scmp.ne.s32.totalorder (!%p261_p9), %s1338_s20, 0 }
  0x24   : > { %s1742_s17 = smov (!%p302_p10, %s1008_s17), 31  ;;  %s1744_s28 = smov (!%p309_p11, %s1011_s28), 3 }
  0x25   : > { %s1052_s29 = sshll.u32 %s1742_s17, 4  ;;  %s1012_s9 = sshll.u32 %s1744_s28, 3  ;;  %v1356_v2 = vmov (!%p1013_p12), 0.0  }
  0x26   : > { %s1458_s8 = scalar_lea.vmem %s1724_s1, %s1052_s29  ;;  %s1463_s18 = scalar_lea.vmem %s1728_s5, %s1012_s9  ;;  %319 = vst [vmem:[#allocation2] sm:$0xff] (!%p1013_p12), %v1356_v2  ;;  %320 = vst [vmem:[#allocation2 + $0x8] sm:$0xff] (!%p1013_p12), %v1356_v2 }
  0x27   : > { %318 = sbr.rel (%p1013_p12) target bundleno = 46 (0x2e), region = 85  ;;  %321 = vst [vmem:[#allocation2 + $0x10] sm:$0xff] (!%p1013_p12), %v1356_v2  ;;  %322 = vst [vmem:[#allocation2 + $0x18] sm:$0xff] (!%p1013_p12), %v1356_v2 }
  0x28   : > { %323 = vst [vmem:[#allocation2 + $0x20] sm:$0xff] (!%p1013_p12), %v1356_v2  ;;  %324 = vst [vmem:[#allocation2 + $0x28] sm:$0xff] (!%p1013_p12), %v1356_v2 }
  0x29   : > { %325 = vst [vmem:[#allocation2 + $0x30] sm:$0xff] (!%p1013_p12), %v1356_v2  ;;  %326 = vst [vmem:[#allocation2 + $0x38] sm:$0xff] (!%p1013_p12), %v1356_v2 }
  0x2e PF: > { %v1251_v3 = vld [vmem:[%s1458_s8 + $0x4] ss:$16 sps:$4 sm:$0xff]   ;;  %v1253_v4 = vld [vmem:[%s1458_s8 + $0xc] ss:$16 sps:$4 sm:$0xff]   ;;  %v1357_v5 = vmov 0   ;;  %p1047_p13 = scmp.ne.s32.totalorder %s1338_s20, 1 }
  0x2f   : > { %567 = vmatprep.mubr.bf16.mxu0 %v1357_v5  ;;  %610 = vmatprep.mubr.bf16.mxu1 %v1357_v5  ;;  %v1255_v6 = vld [vmem:[%s1458_s8] ss:$16 sps:$4 sm:$0xff]   ;;  %v1256_v7 = vld [vmem:[%s1458_s8 + $0x8] ss:$16 sps:$4 sm:$0xff]   ;;  %v1257_v8 = vld [vmem:[%s1458_s8 + $0x24] ss:$16 sps:$4 sm:$0xff]  }
  0x30   : > { %535 = vmatprep.subr.bf16.mxu0 %v1251_v3  ;;  %578 = vmatprep.subr.bf16.mxu1 %v1253_v4  ;;  %v1259_v9 = vld [vmem:[%s1458_s8 + $0x2c] ss:$16 sps:$4 sm:$0xff]   ;;  %v1261_v10 = vld [vmem:[%s1458_s8 + $0x20] ss:$16 sps:$4 sm:$0xff]   ;;  %v1262_v11 = vld [vmem:[%s1458_s8 + $0x28] ss:$16 sps:$4 sm:$0xff]  }
  0x31   : > { %536 = vmatpush1.bf16.msra.mxu0 %v1255_v6  ;;  %579 = vmatpush1.bf16.msra.mxu1 %v1256_v7  ;;  %v1263_v12 = vld [vmem:[%s1458_s8 + $0x44] ss:$16 sps:$4 sm:$0xff]   ;;  %v1265_v13 = vld [vmem:[%s1458_s8 + $0x4c] ss:$16 sps:$4 sm:$0xff]   ;;  %v1267_v14 = vld [vmem:[%s1458_s8 + $0x40] ss:$16 sps:$4 sm:$0xff]  }
  0x32   : > { %537 = vmatprep.subr.bf16.mxu0 %v1257_v8  ;;  %580 = vmatprep.subr.bf16.mxu1 %v1259_v9  ;;  %v1268_v15 = vld [vmem:[%s1458_s8 + $0x48] ss:$16 sps:$4 sm:$0xff]   ;;  %v1269_v16 = vld [vmem:[%s1458_s8 + $0x64] ss:$16 sps:$4 sm:$0xff]   ;;  %v1271_v17 = vld [vmem:[%s1458_s8 + $0x6c] ss:$16 sps:$4 sm:$0xff]  }
  0x33   : > { %v1273_v18 = vld [vmem:[%s1458_s8 + $0x60] ss:$16 sps:$4 sm:$0xff]   ;;  %v1274_v19 = vld [vmem:[%s1458_s8 + $0x68] ss:$16 sps:$4 sm:$0xff]   ;;  %v1275_v20 = vld [vmem:[%s1458_s8 + $0x84] ss:$16 sps:$4 sm:$0xff]  }
  0x34   : > { %v1277_v21 = vld [vmem:[%s1458_s8 + $0x8c] ss:$16 sps:$4 sm:$0xff]   ;;  %v1279_v22 = vld [vmem:[%s1458_s8 + $0x80] ss:$16 sps:$4 sm:$0xff]   ;;  %v1280_v23 = vld [vmem:[%s1458_s8 + $0x88] ss:$16 sps:$4 sm:$0xff]  }
  0x35   : > { %538 = vmatpush1.bf16.msra.mxu0 %v1261_v10  ;;  %581 = vmatpush1.bf16.msra.mxu1 %v1262_v11  ;;  %v1281_v24 = vld [vmem:[%s1458_s8 + $0xa4] ss:$16 sps:$4 sm:$0xff]   ;;  %v1283_v25 = vld [vmem:[%s1458_s8 + $0xac] ss:$16 sps:$4 sm:$0xff]   ;;  %v1285_v26 = vld [vmem:[%s1458_s8 + $0xa0] ss:$16 sps:$4 sm:$0xff]  }
  0x36   : > { %539 = vmatprep.subr.bf16.mxu0 %v1263_v12  ;;  %582 = vmatprep.subr.bf16.mxu1 %v1265_v13  ;;  %v1286_v27 = vld [vmem:[%s1458_s8 + $0xa8] ss:$16 sps:$4 sm:$0xff]   ;;  %v1287_v28 = vld [vmem:[%s1458_s8 + $0xc4] ss:$16 sps:$4 sm:$0xff]   ;;  %v1289_v29 = vld [vmem:[%s1458_s8 + $0xcc] ss:$16 sps:$4 sm:$0xff]  }
  0x37   : > { %v1291_v30 = vld [vmem:[%s1458_s8 + $0xc0] ss:$16 sps:$4 sm:$0xff]   ;;  %v1292_v31 = vld [vmem:[%s1458_s8 + $0xc8] ss:$16 sps:$4 sm:$0xff]   ;;  %v1293_v32 = vld [vmem:[%s1458_s8 + $0xe4] ss:$16 sps:$4 sm:$0xff]  }
  0x38   : > { %v1295_v33 = vld [vmem:[%s1458_s8 + $0xec] ss:$16 sps:$4 sm:$0xff]   ;;  %v1297_v34 = vld [vmem:[%s1458_s8 + $0xe0] ss:$16 sps:$4 sm:$0xff]   ;;  %v1298_v35 = vld [vmem:[%s1458_s8 + $0xe8] ss:$16 sps:$4 sm:$0xff]  }
  0x39   : > { %540 = vmatpush1.bf16.msra.mxu0 %v1267_v14  ;;  %583 = vmatpush1.bf16.msra.mxu1 %v1268_v15  ;;  %v1299_v36 = vld [vmem:[%s269_s12] sm:$0xff]   ;;  %v329_v38 = vld [vmem:[#allocation2 + $0x10] sm:$0xff]  ;;  %v330_v40 = vld [vmem:[#allocation2 + $0x18] sm:$0xff] }
  0x3a   : > { %541 = vmatprep.subr.bf16.mxu0 %v1269_v16  ;;  %584 = vmatprep.subr.bf16.mxu1 %v1271_v17  ;;  %v327_v37 = vld [vmem:[#allocation2] sm:$0xff]  ;;  %v328_v39 = vld [vmem:[#allocation2 + $0x8] sm:$0xff]  ;;  %v333_v44 = vld [vmem:[#allocation2 + $0x30] sm:$0xff] }
  0x3b   : > { %v331_v43 = vld [vmem:[#allocation2 + $0x20] sm:$0xff]  ;;  %v332_v49 = vld [vmem:[#allocation2 + $0x28] sm:$0xff]  ;;  %v334_v50 = vld [vmem:[#allocation2 + $0x38] sm:$0xff] }
  0x3c   : > { %v703_v61 = vld [vmem:[%s1726_s3 + $0x80] sm:$0xff] (!%p1047_p13)  ;;  %v704_v62 = vld [vmem:[%s1726_s3 + $0x88] sm:$0xff] (!%p1047_p13)  ;;  %v705_v8 = vld [vmem:[%s1726_s3 + $0x90] sm:$0xff] (!%p1047_p13) }
  0x3d   : > { %542 = vmatpush1.bf16.msra.mxu0 %v1273_v18  ;;  %585 = vmatpush1.bf16.msra.mxu1 %v1274_v19  ;;  %v687_v63 = vld [vmem:[%s1726_s3] sm:$0xff] (!%p1047_p13)  ;;  %v1129_v0 = vpack.c.bf16 (!%p1047_p13), %v704_v62, %v703_v61  ;;  %v688_v1 = vld [vmem:[%s1726_s3 + $0x8] sm:$0xff] (!%p1047_p13)  ;;  %v706_v10 = vld [vmem:[%s1726_s3 + $0x98] sm:$0xff] (!%p1047_p13) }
  0x3e   : > { %543 = vmatprep.subr.bf16.mxu0 %v1275_v20  ;;  %586 = vmatprep.subr.bf16.mxu1 %v1277_v21  ;;  %v735_v2 = vld [vmem:[%s1726_s3 + $0x180] sm:$0xff] (!%p1047_p13)  ;;  %v736_v3 = vld [vmem:[%s1726_s3 + $0x188] sm:$0xff] (!%p1047_p13)  ;;  %v1131_v4 = vpack.c.bf16 (!%p1047_p13), %v688_v1, %v687_v63  ;;  %v689_v11 = vld [vmem:[%s1726_s3 + $0x10] sm:$0xff] (!%p1047_p13)  ;;  %v1133_v13 = vpack.c.bf16 (!%p1047_p13), %v706_v10, %v705_v8 }
  0x3f   : > { %v1161_v5 = vpack.c.bf16 (!%p1047_p13), %v736_v3, %v735_v2  ;;  %v719_v6 = vld [vmem:[%s1726_s3 + $0x100] sm:$0xff] (!%p1047_p13)  ;;  %v720_v7 = vld [vmem:[%s1726_s3 + $0x108] sm:$0xff] (!%p1047_p13)  ;;  %v690_v12 = vld [vmem:[%s1726_s3 + $0x18] sm:$0xff] (!%p1047_p13) }
  0x40   : > { %v1163_v9 = vpack.c.bf16 (!%p1047_p13), %v720_v7, %v719_v6  ;;  %v1135_v14 = vpack.c.bf16 (!%p1047_p13), %v690_v12, %v689_v11  ;;  %v737_v15 = vld [vmem:[%s1726_s3 + $0x190] sm:$0xff] (!%p1047_p13)  ;;  %v738_v16 = vld [vmem:[%s1726_s3 + $0x198] sm:$0xff] (!%p1047_p13)  ;;  %v707_v20 = vld [vmem:[%s1726_s3 + $0xa0] sm:$0xff] (!%p1047_p13) }
  0x41   : > { %544 = vmatpush1.bf16.msra.mxu0 %v1279_v22  ;;  %587 = vmatpush1.bf16.msra.mxu1 %v1280_v23  ;;  %v721_v17 = vld [vmem:[%s1726_s3 + $0x110] sm:$0xff] (!%p1047_p13)  ;;  %v1165_v18 = vpack.c.bf16 (!%p1047_p13), %v738_v16, %v737_v15  ;;  %v722_v19 = vld [vmem:[%s1726_s3 + $0x118] sm:$0xff] (!%p1047_p13)  ;;  %v708_v21 = vld [vmem:[%s1726_s3 + $0xa8] sm:$0xff] (!%p1047_p13) }
  0x42   : > { %545 = vmatprep.subr.bf16.mxu0 %v1281_v24  ;;  %588 = vmatprep.subr.bf16.mxu1 %v1283_v25  ;;  %v1167_v22 = vpack.c.bf16 (!%p1047_p13), %v722_v19, %v721_v17  ;;  %v1137_v23 = vpack.c.bf16 (!%p1047_p13), %v708_v21, %v707_v20  ;;  %v691_v24 = vld [vmem:[%s1726_s3 + $0x20] sm:$0xff] (!%p1047_p13)  ;;  %v692_v25 = vld [vmem:[%s1726_s3 + $0x28] sm:$0xff] (!%p1047_p13)  ;;  %v698_v1 = vld [vmem:[%s1726_s3 + $0x58] sm:$0xff] (!%p1047_p13) }
  0x43   : > { %v729_v2 = vld [vmem:[%s1726_s3 + $0x150] sm:$0xff] (!%p1047_p13)  ;;  %v716_v6 = vld [vmem:[%s1726_s3 + $0xe8] sm:$0xff] (!%p1047_p13)  ;;  %v731_v15 = vld [vmem:[%s1726_s3 + $0x160] sm:$0xff] (!%p1047_p13) }
  0x44   : > { %v748_v10 = vld [vmem:[%s1726_s3 + $0x1e8] sm:$0xff] (!%p1047_p13)  ;;  %v649_v21 = vld [vmem:[%s1725_s2] sm:$0xf] (!%p1047_p13) }
  0x45   : > { %546 = vmatpush1.bf16.msra.mxu0 %v1285_v26  ;;  %589 = vmatpush1.bf16.msra.mxu1 %v1286_v27  ;;  %v739_v26 = vld [vmem:[%s1726_s3 + $0x1a0] sm:$0xff] (!%p1047_p13)  ;;  %v740_v27 = vld [vmem:[%s1726_s3 + $0x1a8] sm:$0xff] (!%p1047_p13) }
  0x46   : > { %547 = vmatprep.subr.bf16.mxu0 %v1287_v28  ;;  %590 = vmatprep.subr.bf16.mxu1 %v1289_v29  ;;  %v723_v28 = vld [vmem:[%s1726_s3 + $0x120] sm:$0xff] (!%p1047_p13)  ;;  %v724_v29 = vld [vmem:[%s1726_s3 + $0x128] sm:$0xff] (!%p1047_p13) }
  0x47   : > { %v732_v19 = vld [vmem:[%s1726_s3 + $0x168] sm:$0xff] (!%p1047_p13) }
  0x49   : > { %548 = vmatpush1.bf16.msra.mxu0 %v1291_v30  ;;  %591 = vmatpush1.bf16.msra.mxu1 %v1292_v31  ;;  %v1139_v30 = vpack.c.bf16 (!%p1047_p13), %v692_v25, %v691_v24  ;;  %v1169_v31 = vpack.c.bf16 (!%p1047_p13), %v740_v27, %v739_v26  ;;  %v718_v24 = vld [vmem:[%s1726_s3 + $0xf8] sm:$0xff] (!%p1047_p13) }
  0x4a   : > { %549 = vmatprep.subr.bf16.mxu0 %v1293_v32  ;;  %592 = vmatprep.subr.bf16.mxu1 %v1295_v33  ;;  %v709_v32 = vld [vmem:[%s1726_s3 + $0xb0] sm:$0xff] (!%p1047_p13)  ;;  %v710_v33 = vld [vmem:[%s1726_s3 + $0xb8] sm:$0xff] (!%p1047_p13) }
  0x4d   : > { %550 = vmatpush1.bf16.msra.mxu0 %v1297_v34  ;;  %593 = vmatpush1.bf16.msra.mxu1 %v1298_v35  ;;  %v693_v34 = vld [vmem:[%s1726_s3 + $0x30] sm:$0xff] (!%p1047_p13)  ;;  %v1171_v35 = vpack.c.bf16 (!%p1047_p13), %v724_v29, %v723_v28  ;;  %v750_v29 = vld [vmem:[%s1726_s3 + $0x1f8] sm:$0xff] (!%p1047_p13) }
  0x4e   : > { %1130 = vmatprep.subr.bf16.mxu0 (!%p1047_p13), %v1129_v0  ;;  %1162 = vmatprep.subr.bf16.mxu1 (!%p1047_p13), %v1161_v5  ;;  %v697_v0 = vld [vmem:[%s1726_s3 + $0x50] sm:$0xff] (!%p1047_p13)  ;;  %v715_v5 = vld [vmem:[%s1726_s3 + $0xe0] sm:$0xff] (!%p1047_p13) }
  0x4f   : > { %v1151_v12 = vpack.c.bf16 (!%p1047_p13), %v698_v1, %v697_v0  ;;  %v749_v28 = vld [vmem:[%s1726_s3 + $0x1f0] sm:$0xff] (!%p1047_p13)  ;;  %v1048_v1 = vld [vmem:[%s1727_s4] ss:$0 sm:$0xff] (!%p1047_p13) }
  0x50   : > { %568 = vmatmul.mubr.bf16.vlgmr.msra.gmra.mrb[0].mxu0 %v1299_v36  ;;  %611 = vmatmul.mubr.bf16.vlgmr.msra.gmra.mrb[0].mxu1 %v1299_v36  ;;  %v1141_v36 = vpack.c.bf16 (!%p1047_p13), %v710_v33, %v709_v32  ;;  %v701_v32 = vld [vmem:[%s1726_s3 + $0x70] sm:$0xff] (!%p1047_p13) }
  0x51   : > { %1132 = vmatpush3.bf16.msra.mxu0 (!%p1047_p13), %v1131_v4  ;;  %1164 = vmatpush3.bf16.msra.mxu1 (!%p1047_p13), %v1163_v9  ;;  %v730_v4 = vld [vmem:[%s1726_s3 + $0x158] sm:$0xff] (!%p1047_p13)  ;;  %v747_v9 = vld [vmem:[%s1726_s3 + $0x1e0] sm:$0xff] (!%p1047_p13) }
  0x52   : > { %1134 = vmatprep.subr.bf16.mxu0 (!%p1047_p13), %v1133_v13  ;;  %1166 = vmatprep.subr.bf16.mxu1 (!%p1047_p13), %v1165_v18  ;;  %v699_v13 = vld [vmem:[%s1726_s3 + $0x60] sm:$0xff] (!%p1047_p13)  ;;  %v1183_v17 = vpack.c.bf16 (!%p1047_p13), %v730_v4, %v729_v2  ;;  %v1153_v18 = vpack.c.bf16 (!%p1047_p13), %v716_v6, %v715_v5 }
  0x55   : > { %1136 = vmatpush3.bf16.msra.mxu0 (!%p1047_p13), %v1135_v14  ;;  %1168 = vmatpush3.bf16.msra.mxu1 (!%p1047_p13), %v1167_v22  ;;  %v700_v14 = vld [vmem:[%s1726_s3 + $0x68] sm:$0xff] (!%p1047_p13)  ;;  %v1185_v22 = vpack.c.bf16 (!%p1047_p13), %v748_v10, %v747_v9 }
  0x56   : > { %1138 = vmatprep.subr.bf16.mxu0 (!%p1047_p13), %v1137_v23  ;;  %1170 = vmatprep.subr.bf16.mxu1 (!%p1047_p13), %v1169_v31  ;;  %v717_v23 = vld [vmem:[%s1726_s3 + $0xf0] sm:$0xff] (!%p1047_p13)  ;;  %v1155_v31 = vpack.c.bf16 (!%p1047_p13), %v700_v14, %v699_v13 }
  0x59   : > { %1140 = vmatpush3.bf16.msra.mxu0 (!%p1047_p13), %v1139_v30  ;;  %1172 = vmatpush3.bf16.msra.mxu1 (!%p1047_p13), %v1171_v35 }
  0x5a   : > { %1142 = vmatprep.subr.bf16.mxu0 (!%p1047_p13), %v1141_v36 }
 0x123   : > { %v569_v41 = vpop.f32.mrb[0].mxu0  ;;  %v612_v42 = vpop.f32.mrb[0].mxu1  ;;  %640 = sbr.rel (%p1047_p13) target bundleno = 540 (0x21c), region = 89 }
 0x124   : > { %v621_v45 = vadd.f32 %v569_v41, %v327_v37  ;;  %v623_v46 = vadd.f32 %v612_v42, %v329_v38  ;;  %v571_v47 = vpop.f32.mrb[1].mxu0  ;;  %v614_v48 = vpop.f32.mrb[1].mxu1  ;;  %v694_v37 = vld [vmem:[%s1726_s3 + $0x38] sm:$0xff] (!%p1047_p13)  ;;  %v741_v38 = vld [vmem:[%s1726_s3 + $0x1b0] sm:$0xff] (!%p1047_p13) }
 0x125   : > { %v622_v51 = vadd.f32 %v571_v47, %v328_v39  ;;  %v624_v52 = vadd.f32 %v614_v48, %v330_v40  ;;  %v573_v53 = vpop.f32.mrb[2].mxu0  ;;  %v616_v54 = vpop.f32.mrb[2].mxu1  ;;  %v742_v39 = vld [vmem:[%s1726_s3 + $0x1b8] sm:$0xff] (!%p1047_p13)  ;;  %v725_v41 = vld [vmem:[%s1726_s3 + $0x130] sm:$0xff] (!%p1047_p13)  ;;  %v743_v47 = vld [vmem:[%s1726_s3 + $0x1c0] sm:$0xff] (!%p1047_p13) }
 0x126   : > { %629 = vst [vmem:[#allocation2] sm:$0xff] %v621_v45  ;;  %631 = vst [vmem:[#allocation2 + $0x10] sm:$0xff] %v623_v46  ;;  %v625_v55 = vadd.f32 %v573_v53, %v331_v43  ;;  %v627_v56 = vadd.f32 %v616_v54, %v333_v44  ;;  %v575_v57 = vpop.f32.mrb[3].mxu0  ;;  %v618_v58 = vpop.f32.mrb[3].mxu1  ;;  %v1173_v40 = vpack.c.bf16 (!%p1047_p13), %v742_v39, %v741_v38  ;;  %v726_v42 = vld [vmem:[%s1726_s3 + $0x138] sm:$0xff] (!%p1047_p13)  ;;  %v711_v43 = vld [vmem:[%s1726_s3 + $0xc0] sm:$0xff] (!%p1047_p13)  ;;  %v651_v44 = vlaneseq (!%p1047_p13) }
 0x127   : > { %630 = vst [vmem:[#allocation2 + $0x8] sm:$0xff] %v622_v51  ;;  %632 = vst [vmem:[#allocation2 + $0x18] sm:$0xff] %v624_v52  ;;  %v626_v59 = vadd.f32 %v575_v57, %v332_v49  ;;  %v628_v60 = vadd.f32 %v618_v58, %v334_v50  ;;  %v712_v45 = vld [vmem:[%s1726_s3 + $0xc8] sm:$0xff] (!%p1047_p13)  ;;  %v1143_v46 = vpack.c.bf16 (!%p1047_p13), %v694_v37, %v693_v34  ;;  %v695_v51 = vld [vmem:[%s1726_s3 + $0x40] sm:$0xff] (!%p1047_p13) }
 0x128   : > { %633 = vst [vmem:[#allocation2 + $0x20] sm:$0xff] %v625_v55  ;;  %635 = vst [vmem:[#allocation2 + $0x30] sm:$0xff] %v627_v56  ;;  %v744_v48 = vld [vmem:[%s1726_s3 + $0x1c8] sm:$0xff] (!%p1047_p13)  ;;  %v1175_v49 = vpack.c.bf16 (!%p1047_p13), %v726_v42, %v725_v41  ;;  %v1145_v50 = vpack.c.bf16 (!%p1047_p13), %v712_v45, %v711_v43  ;;  %v727_v53 = vld [vmem:[%s1726_s3 + $0x140] sm:$0xff] (!%p1047_p13)  ;;  %1174 = vmatprep.subr.bf16.mxu1 (!%p1047_p13), %v1173_v40  ;;  %v652_v58 = vshrl.u32 (!%p1047_p13), %v651_v44, 7 }
 0x129   : > { %634 = vst [vmem:[#allocation2 + $0x28] sm:$0xff] %v626_v59  ;;  %636 = vst [vmem:[#allocation2 + $0x38] sm:$0xff] %v628_v60  ;;  %v696_v52 = vld [vmem:[%s1726_s3 + $0x48] sm:$0xff] (!%p1047_p13)  ;;  %v1177_v54 = vpack.c.bf16 (!%p1047_p13), %v744_v48, %v743_v47  ;;  %v713_v56 = vld [vmem:[%s1726_s3 + $0xd0] sm:$0xff] (!%p1047_p13)  ;;  %1144 = vmatpush3.bf16.msra.mxu0 (!%p1047_p13), %v1143_v46  ;;  %v1187_v37 = vpack.c.bf16 (!%p1047_p13), %v732_v19, %v731_v15  ;;  %v1157_v38 = vpack.c.bf16 (!%p1047_p13), %v718_v24, %v717_v23 }
 0x12a   : > { %v728_v55 = vld [vmem:[%s1726_s3 + $0x148] sm:$0xff]  ;;  %v714_v57 = vld [vmem:[%s1726_s3 + $0xd8] sm:$0xff]  ;;  %v745_v59 = vld [vmem:[%s1726_s3 + $0x1d0] sm:$0xff]  ;;  %v1147_v61 = vpack.c.bf16 %v696_v52, %v695_v51  ;;  %1176 = vmatpush3.bf16.msra.mxu1 %v1175_v49  ;;  %1146 = vmatprep.subr.bf16.mxu0 %v1145_v50  ;;  %v657_v7 = vsub.s32 1, %v652_v58  ;;  %v665_v8 = vsub.s32 3, %v652_v58  ;;  %v653_v11 = vsub.s32 0, %v652_v58 }
 0x12b   : > { %v746_v60 = vld [vmem:[%s1726_s3 + $0x1d8] sm:$0xff]  ;;  %v1179_v62 = vpack.c.bf16 %v728_v55, %v727_v53  ;;  %v1149_v63 = vpack.c.bf16 %v714_v57, %v713_v56  ;;  %1178 = vmatprep.subr.bf16.mxu1 %v1177_v54  ;;  %v661_v16 = vsub.s32 2, %v652_v58  ;;  %v1189_v42 = vpack.c.bf16 %v750_v29, %v749_v28  ;;  %v733_v43 = vld [vmem:[%s1726_s3 + $0x170] sm:$0xff] }
 0x12c   : > { %v1181_v3 = vpack.c.bf16 %v746_v60, %v745_v59  ;;  %v658_v25 = vrot.slane %v649_v21, %v657_v7  ;;  %v666_v27 = vrot.slane %v649_v21, %v665_v8  ;;  %v654_v30 = vrot.slane %v649_v21, %v653_v11  ;;  %v702_v39 = vld [vmem:[%s1726_s3 + $0x78] sm:$0xff] }
 0x12d   : > { %1148 = vmatpush3.bf16.msra.mxu0 %v1147_v61  ;;  %v641_v34 = vld [vmem:[#allocation2] sm:$0xff]  ;;  %v662_v36 = vrot.slane %v649_v21, %v661_v16  ;;  %v643_v40 = vld [vmem:[#allocation2 + $0x10] sm:$0xff]  ;;  %v734_v44 = vld [vmem:[%s1726_s3 + $0x178] sm:$0xff]  ;;  %v1159_v49 = vpack.c.bf16 %v702_v39, %v701_v32 }
 0x12e   : > { %1180 = vmatpush3.bf16.msra.mxu1 %v1179_v62  ;;  %1150 = vmatprep.subr.bf16.mxu0 %v1149_v63  ;;  %v642_v20 = vld [vmem:[#allocation2 + $0x8] sm:$0xff]  ;;  %v644_v26 = vld [vmem:[#allocation2 + $0x18] sm:$0xff]  ;;  %v671_v48 = vadd.f32 %v654_v30, %v641_v34  ;;  %v1191_v53 = vpack.c.bf16 %v734_v44, %v733_v43 }
 0x12f   : > { %1182 = vmatprep.subr.bf16.mxu1 %v1181_v3  ;;  %v672_v33 = vadd.f32 %v658_v25, %v642_v20  ;;  %v674_v35 = vadd.f32 %v666_v27, %v644_v26  ;;  %v673_v50 = vadd.f32 %v662_v36, %v643_v40  ;;  %v645_v52 = vld [vmem:[#allocation2 + $0x20] sm:$0xff]  ;;  %v647_v55 = vld [vmem:[#allocation2 + $0x30] sm:$0xff] }
 0x130   : > { %v646_v41 = vld [vmem:[#allocation2 + $0x28] sm:$0xff]  ;;  %v648_v47 = vld [vmem:[#allocation2 + $0x38] sm:$0xff]  ;;  %v679_v56 = vmax.f32 %v671_v48, 0.0  ;;  %v675_v57 = vadd.f32 %v654_v30, %v645_v52  ;;  %v677_v60 = vadd.f32 %v662_v36, %v647_v55 }
 0x131   : > { %1152 = vmatpush3.bf16.msra.mxu0 %v1151_v12  ;;  %v680_v45 = vmax.f32 %v672_v33, 0.0  ;;  %v682_v46 = vmax.f32 %v674_v35, 0.0  ;;  %v676_v51 = vadd.f32 %v658_v25, %v646_v41  ;;  %v678_v54 = vadd.f32 %v666_v27, %v648_v47 }
 0x132   : > { %1184 = vmatpush3.bf16.msra.mxu1 %v1183_v17  ;;  %1154 = vmatprep.subr.bf16.mxu0 %v1153_v18  ;;  %v681_v58 = vmax.f32 %v673_v50, 0.0  ;;  %v683_v62 = vmax.f32 %v675_v57, 0.0  ;;  %v685_v63 = vmax.f32 %v677_v60, 0.0 }
 0x133   : > { %1186 = vmatprep.subr.bf16.mxu1 %v1185_v22  ;;  %822 = vmatprep.mubr.f32.mxu0 %v680_v45  ;;  %v684_v59 = vmax.f32 %v676_v51, 0.0  ;;  %v686_v61 = vmax.f32 %v678_v54, 0.0 }
 0x134   : > { %897 = vmatprep.mubr.f32.mxu1 %v682_v46 }
 0x135   : > { %1156 = vmatpush3.bf16.msra.mxu0 %v1155_v31 }
 0x136   : > { %1188 = vmatpush3.bf16.msra.mxu1 %v1187_v37  ;;  %1158 = vmatprep.subr.bf16.mxu0 %v1157_v38 }
 0x137   : > { %1190 = vmatprep.subr.bf16.mxu1 %v1189_v42 }
 0x139   : > { %1160 = vmatpush3.bf16.msra.mxu0 %v1159_v49 }
 0x13a   : > { %1192 = vmatpush3.bf16.msra.mxu1 %v1191_v53 }
 0x13c   : > { %823 = vmatmul.mubr.f32.vlgmr.msra.gmra.mrb[0].mxu0 %v679_v56 }
 0x13d   : > { %898 = vmatmul.mubr.f32.vlgmr.msra.gmra.mrb[0].mxu1 %v681_v58  ;;  %827 = vmatprep.mubr.f32.mxu0 %v684_v59 }
 0x13e   : > { %902 = vmatprep.mubr.f32.mxu1 %v686_v61 }
 0x140   : > { %828 = vmatmul.mubr.f32.gmra.mrb[2].mxu0 %v683_v62 }
 0x141   : > { %903 = vmatmul.mubr.f32.gmra.mrb[2].mxu1 %v685_v63 }
 0x20f   : > { %v1085_v0 = vpop.f32.mrb[0].mxu0 }
 0x210   : > { %v1086_v2 = vpop.f32.mrb[1].mxu0  ;;  %v1123_v3 = vpop.f32.mrb[0].mxu1 }
 0x211   : > { %v1087_v4 = vadd.f32 %v1086_v2, %v1085_v0  ;;  %v1124_v5 = vpop.f32.mrb[1].mxu1 }
 0x212   : > { %v1125_v6 = vadd.f32 %v1124_v5, %v1123_v3 }
 0x213   : > { %v825_v7 = vadd.f32 %v1087_v4, %v1048_v1  ;;  %v1088_v8 = vpop.f32.mrb[2].mxu0 }
 0x214   : > { %v1089_v9 = vpop.f32.mrb[3].mxu0  ;;  %v1126_v10 = vpop.f32.mrb[2].mxu1 }
 0x215   : > { %v900_v11 = vadd.f32 %v1125_v6, %v825_v7  ;;  %v1090_v12 = vadd.f32 %v1089_v9, %v1088_v8  ;;  %v1127_v13 = vpop.f32.mrb[3].mxu1 }
 0x216   : > { %v1128_v14 = vadd.f32 %v1127_v13, %v1126_v10 }
 0x217   : > { %908 = vst [vmem:[%s1463_s18] sm:$0xff] %v900_v11  ;;  %v830_v15 = vadd.f32 %v1090_v12, %v1048_v1 }
 0x219   : > { %v905_v16 = vadd.f32 %v1128_v14, %v830_v15 }
 0x21b   : > { %909 = vst [vmem:[%s1463_s18 + $0x8] sm:$0xff] %v905_v16 }
 0x21c PF: > { %s15_s24 = sadd.s32 1, %s1354_s24   ;;  %s1729_s18 = smov %s1334_s19 }
 0x21d   : > { %p12_p0 = scmp.ge.s32.totalorder %s15_s24, 6   ;;  %s1730_s19 = smov %s1439_s6 }
 0x21e   : > { %s1731_s20 = smov %s1346_s22  ;;  %s1732_s21 = smov %s1350_s23 }
 0x21f   : > { %s1733_s22 = smov %s1736_s25  ;;  %s1734_s23 = smov %s1740_s26 }
 0x220   :  { %14 = sbr.rel (!%p12_p0) target bundleno = 4 (0x4), region = 127 }

</bundles_post_ra>
